<compile_context>
chip_gen: v7x
topology: tpu7x:2x2x1
jax: 0.10.0
libtpu: 0.0.40
codegen_flags: <defaults>
</compile_context>

<pallas_src>
import numpy as np
import jax
import jax.numpy as jnp
from jax import lax
from jax.experimental import pallas as pl
from jax.experimental.pallas import tpu as pltpu

BN_EPS = 1e-5
L2_EPS = 1e-12
SUBLANE = 8


def _round_up(x, m):
    return (x + m - 1) // m * m


# --------------------------------------------------------------------------- #
# Kernel
# --------------------------------------------------------------------------- #
def _clip_encoder_kernel(x_ref, w1_ref, b1_ref, w2_ref, b2_ref, out_ref):
    """One (branch, batch-tile) grid step of the fused CLIP encoder.

    Ref shapes (leading size-1 branch axis is selected by the grid):
      x:  (1, TB, IN)   bf16     w1: (1, IN, H)  bf16    b1: (1, 1, H)  f32
      w2: (1, H, L)     bf16     b2: (1, 1, L)   f32     out: (1, TB, L) f32

    BatchNorm (eval) is pre-folded into w/b at init time; dropout = identity.
    Padded input-feature lanes carry exact zeros, so they contribute nothing
    to the first matmul.
    """
    x = x_ref[0]                                                  # (TB, IN) bf16

    # Linear 1 (+ folded BN1); bf16 operands, f32 MXU accumulation
    h = jnp.dot(x, w1_ref[0], preferred_element_type=jnp.float32) + b1_ref[0]
    # ELU(alpha=1); clamp the exp argument so the inactive branch never sees inf
    h = jnp.where(h > 0, h, jnp.exp(jnp.minimum(h, 0.0)) - 1.0)
    # Linear 2 (+ folded BN2)
    h = jnp.dot(h.astype(jnp.bfloat16), w2_ref[0],
                preferred_element_type=jnp.float32) + b2_ref[0]
    h = jnp.tanh(h)

    # F.normalize(p=2, dim=-1): h / max(||h||, eps) == h * rsqrt(max(||h||^2, eps^2))
    ssq = jnp.sum(h * h, axis=-1, keepdims=True)
    inv = lax.rsqrt(jnp.maximum(ssq, L2_EPS * L2_EPS))            # single EUP op
    out_ref[0] = h * inv


# --------------------------------------------------------------------------- #
# Parameter construction (mirrors the PyTorch module, eval-mode BN stats)
# --------------------------------------------------------------------------- #
def _xavier_normal(key, in_f, out_f):
    # nn.init.xavier_normal_ on a (out_f, in_f) weight; stored transposed.
    std = float(np.sqrt(2.0 / (in_f + out_f)))
    return jax.random.normal(key, (in_f, out_f), dtype=jnp.float32) * std


def make_encoder_params(key, in_size, hidden_size, latent_dim):
    k1, k2 = jax.random.split(key)
    f32 = jnp.float32
    return dict(
        w1=_xavier_normal(k1, in_size, hidden_size),
        b1=jnp.zeros((hidden_size,), f32),
        g1=jnp.ones((hidden_size,), f32), be1=jnp.zeros((hidden_size,), f32),
        m1=jnp.zeros((hidden_size,), f32), v1=jnp.ones((hidden_size,), f32),
        w2=_xavier_normal(k2, hidden_size, latent_dim),
        b2=jnp.zeros((latent_dim,), f32),
        g2=jnp.ones((latent_dim,), f32), be2=jnp.zeros((latent_dim,), f32),
        m2=jnp.zeros((latent_dim,), f32), v2=jnp.ones((latent_dim,), f32),
    )


def _fold_bn_into_linear(w, b, gamma, beta, mean, var):
    """y = BN(x @ w + b)  ==  x @ (w*s) + (b*s + (beta - mean*s)), s = gamma/sqrt(var+eps)."""
    s = gamma / jnp.sqrt(var + BN_EPS)
    return w * s[None, :], b * s + (beta - mean * s)


def prepare_clip_params(params_x, params_y):
    """One-time (init-time) prep: fold BN, pad the input axis, stack branches,
    cast weights to bf16.  Call ONCE outside the hot path."""
    in_pad = _round_up(max(params_x["w1"].shape[0], params_y["w1"].shape[0]), SUBLANE)

    def prep(p):
        w1f, b1f = _fold_bn_into_linear(p["w1"], p["b1"], p["g1"], p["be1"], p["m1"], p["v1"])
        w2f, b2f = _fold_bn_into_linear(p["w2"], p["b2"], p["g2"], p["be2"], p["m2"], p["v2"])
        w1p = jnp.pad(w1f, ((0, in_pad - w1f.shape[0]), (0, 0))).astype(jnp.bfloat16)
        return (w1p, b1f[None, :], w2f.astype(jnp.bfloat16), b2f[None, :])

    px, py = prep(params_x), prep(params_y)
    w1s, b1s, w2s, b2s = (jnp.stack([a, b]) for a, b in zip(px, py))
    return dict(w1=w1s, b1=b1s, w2=w2s, b2=b2s)   # shapes: (2,IN,H) (2,1,H) (2,H,L) (2,1,L)


# --------------------------------------------------------------------------- #
# Forward wrapper (single fused pallas_call for both branches)
# --------------------------------------------------------------------------- #
def clip_forward(x, y, prepped, logit_scale, *, max_batch_tile=1024):
    w1s, b1s, w2s, b2s = prepped["w1"], prepped["b1"], prepped["w2"], prepped["b2"]
    in_pad = w1s.shape[1]
    hidden = w1s.shape[2]
    latent = w2s.shape[2]
    B = x.shape[0]

    tile_b = min(max_batch_tile, _round_up(B, SUBLANE))
    b_pad = _round_up(B, tile_b)

    # Only x/y prep remains in the hot path: pad batch + feature axes, stack
    # the two branches, cast to bf16 (halves the kernel's input DMA bytes).
    def pad_cast(a):
        return jnp.pad(a, ((0, b_pad - a.shape[0]),
                           (0, in_pad - a.shape[1]))).astype(jnp.bfloat16)

    xs = jnp.stack([pad_cast(x), pad_cast(y)])           # (2, b_pad, in_pad) bf16

    grid = (2, b_pad // tile_b)   # (branch, batch-tile) -- both data-parallel

    out = pl.pallas_call(
        _clip_encoder_kernel,
        out_shape=jax.ShapeDtypeStruct((2, b_pad, latent), jnp.float32),
        grid_spec=pltpu.PrefetchScalarGridSpec(
            num_scalar_prefetch=0,
            grid=grid,
            in_specs=[
                # x tile: last dim == full array dim (no 128-lane padding needed)
                pl.BlockSpec((1, tile_b, in_pad), lambda br, bt: (br, bt, 0)),
                # weights/biases stay resident across the batch-tile axis
                pl.BlockSpec((1, in_pad, hidden), lambda br, bt: (br, 0, 0)),
                pl.BlockSpec((1, 1, hidden), lambda br, bt: (br, 0, 0)),
                pl.BlockSpec((1, hidden, latent), lambda br, bt: (br, 0, 0)),
                pl.BlockSpec((1, 1, latent), lambda br, bt: (br, 0, 0)),
            ],
            # full-dim latent block: HBM writeback is only B*latent f32, no 8x
            # zero-lane amplification
            out_specs=pl.BlockSpec((1, tile_b, latent), lambda br, bt: (br, bt, 0)),
        ),
        compiler_params=pltpu.CompilerParams(
            # leading "parallel" branch axis lets v7x put one encoder per TC;
            # batch axis is also parallel for large B.
            dimension_semantics=("parallel", "parallel"),
            # tiny footprint (<1 MiB double-buffered); keep <= 32 MiB so the
            # same tiling is safe under v7x's 64 MiB physical / 32 MiB scoped VMEM.
            vmem_limit_bytes=32 * 1024 * 1024,
        ),
    )(xs, w1s, b1s, w2s, b2s)

    e_x = out[0, :B, :]
    e_y = out[1, :B, :]
    return e_x, e_y, jnp.exp(logit_scale)


# --------------------------------------------------------------------------- #
# Pure-JAX reference (unfolded, unpadded, f32) for correctness checking
# --------------------------------------------------------------------------- #
def _ref_encoder(x, p):
    h = x @ p["w1"] + p["b1"]
    h = (h - p["m1"]) / jnp.sqrt(p["v1"] + BN_EPS) * p["g1"] + p["be1"]
    h = jnp.where(h > 0, h, jnp.exp(jnp.minimum(h, 0.0)) - 1.0)
    h = h @ p["w2"] + p["b2"]
    h = (h - p["m2"]) / jnp.sqrt(p["v2"] + BN_EPS) * p["g2"] + p["be2"]
    h = jnp.tanh(h)
    n = jnp.sqrt(jnp.sum(h * h, axis=-1, keepdims=True))
    return h / jnp.maximum(n, L2_EPS)


if __name__ == "__main__":
    # Shapes consistent with the module constructor:
    # ClipModel(x_input_size=32, y_input_size=24, latent_dim=16, hidden_size=64, dropout=0.1)
    B, X_IN, Y_IN, HIDDEN, LATENT = 8, 32, 24, 64, 16

    key = jax.random.PRNGKey(0)
    kx, ky, kpx, kpy = jax.random.split(key, 4)

    x = jax.random.normal(kx, (B, X_IN), dtype=jnp.float32)
    y = jax.random.normal(ky, (B, Y_IN), dtype=jnp.float32)

    params_x = make_encoder_params(kpx, X_IN, HIDDEN, LATENT)
    params_y = make_encoder_params(kpy, Y_IN, HIDDEN, LATENT)
    logit_scale = jnp.asarray(np.log(1.0 / 0.07), dtype=jnp.float32)

    # One-time parameter prep (BN fold + pad + stack + bf16) -- NOT in the hot path.
    prepped = jax.block_until_ready(prepare_clip_params(params_x, params_y))

    fwd = jax.jit(clip_forward, static_argnames=("max_batch_tile",))
    e_x, e_y, scale = jax.block_until_ready(fwd(x, y, prepped, logit_scale))

    # Sanity checks: shapes, match vs. pure-JAX f32 reference (bf16 matmul
    # operands -> loosened tolerance), unit-norm embeddings.
    assert e_x.shape == (B, LATENT) and e_y.shape == (B, LATENT)
    ref_x = np.asarray(_ref_encoder(x, params_x))
    ref_y = np.asarray(_ref_encoder(y, params_y))
    assert np.allclose(np.asarray(e_x), ref_x, atol=1e-2, rtol=1e-2)
    assert np.allclose(np.asarray(e_y), ref_y, atol=1e-2, rtol=1e-2)
    assert np.allclose(np.linalg.norm(np.asarray(e_x), axis=-1), 1.0, atol=1e-3)
    assert np.allclose(np.linalg.norm(np.asarray(e_y), axis=-1), 1.0, atol=1e-3)
    assert np.allclose(float(scale), 1.0 / 0.07, rtol=1e-5)

    print("KERNEL_OK")
</pallas_src>

<mosaic_0001>
module attributes {stable_mosaic.version = 11 : i64} {
  func.func @_clip_encoder_kernel(%arg0: i32, %arg1: i32, %arg2: memref<1x8x32xbf16, #tpu.memory_space<vmem>>, %arg3: memref<1x32x64xbf16, #tpu.memory_space<vmem>>, %arg4: memref<1x1x64xf32, #tpu.memory_space<vmem>>, %arg5: memref<1x64x16xbf16, #tpu.memory_space<vmem>>, %arg6: memref<1x1x16xf32, #tpu.memory_space<vmem>>, %arg7: memref<1x8x16xf32, #tpu.memory_space<vmem>>) attributes {dimension_semantics = [#tpu.dimension_semantics<parallel>, #tpu.dimension_semantics<parallel>], iteration_bounds = array<i64: 2, 1>, scalar_prefetch = 0 : i64, scratch_operands = 0 : i64, tpu.core_type = #tpu.core_type<tc>, window_params = [{transform_indices = @transform_0, window_bounds = array<i64: 1, 8, 32>}, {transform_indices = @transform_1, window_bounds = array<i64: 1, 32, 64>}, {transform_indices = @transform_2, window_bounds = array<i64: 1, 1, 64>}, {transform_indices = @transform_3, window_bounds = array<i64: 1, 64, 16>}, {transform_indices = @transform_4, window_bounds = array<i64: 1, 1, 16>}, {transform_indices = @transform_5, window_bounds = array<i64: 1, 8, 16>}]} {
    %c0 = arith.constant 0 : index
    %c0_0 = arith.constant 0 : index
    %c0_1 = arith.constant 0 : index
    %0 = vector.load %arg2[%c0, %c0_0, %c0_1] : memref<1x8x32xbf16, #tpu.memory_space<vmem>>, vector<1x8x32xbf16>
    %1 = vector.shape_cast %0 : vector<1x8x32xbf16> to vector<8x32xbf16>
    %c0_2 = arith.constant 0 : index
    %c0_3 = arith.constant 0 : index
    %c0_4 = arith.constant 0 : index
    %2 = vector.load %arg3[%c0_2, %c0_3, %c0_4] : memref<1x32x64xbf16, #tpu.memory_space<vmem>>, vector<1x32x64xbf16>
    %3 = vector.shape_cast %2 : vector<1x32x64xbf16> to vector<32x64xbf16>
    %cst = arith.constant dense<0.000000e+00> : vector<8x64xf32>
    %4 = tpu.matmul %1, %3, %cst {dimension_numbers = #tpu.dot_dimension_numbers<[1], [0], [0], [1], [0, 0, 1, 1], [], []>} : vector<8x32xbf16>, vector<32x64xbf16>, vector<8x64xf32> -> vector<8x64xf32>
    %c0_5 = arith.constant 0 : index
    %c0_6 = arith.constant 0 : index
    %c0_7 = arith.constant 0 : index
    %5 = vector.load %arg4[%c0_5, %c0_6, %c0_7] : memref<1x1x64xf32, #tpu.memory_space<vmem>>, vector<1x1x64xf32>
    %6 = vector.shape_cast %5 : vector<1x1x64xf32> to vector<1x64xf32>
    %7 = vector.broadcast %6 : vector<1x64xf32> to vector<8x64xf32>
    %8 = arith.addf %4, %7 : vector<8x64xf32>
    %cst_8 = arith.constant 0.000000e+00 : f32
    %9 = vector.broadcast %cst_8 : f32 to vector<8x64xf32>
    %10 = arith.cmpf ogt, %8, %9 : vector<8x64xf32>
    %cst_9 = arith.constant 0.000000e+00 : f32
    %11 = vector.broadcast %cst_9 : f32 to vector<8x64xf32>
    %12 = arith.minimumf %8, %11 : vector<8x64xf32>
    %13 = math.exp %12 : vector<8x64xf32>
    %cst_10 = arith.constant 1.000000e+00 : f32
    %14 = vector.broadcast %cst_10 : f32 to vector<8x64xf32>
    %15 = arith.subf %13, %14 : vector<8x64xf32>
    %16 = arith.select %10, %8, %15 : vector<8x64xi1>, vector<8x64xf32>
    %17 = arith.truncf %16 : vector<8x64xf32> to vector<8x64xbf16>
    %c0_11 = arith.constant 0 : index
    %c0_12 = arith.constant 0 : index
    %c0_13 = arith.constant 0 : index
    %18 = vector.load %arg5[%c0_11, %c0_12, %c0_13] : memref<1x64x16xbf16, #tpu.memory_space<vmem>>, vector<1x64x16xbf16>
    %19 = vector.shape_cast %18 : vector<1x64x16xbf16> to vector<64x16xbf16>
    %cst_14 = arith.constant dense<0.000000e+00> : vector<8x16xf32>
    %20 = tpu.matmul %17, %19, %cst_14 {dimension_numbers = #tpu.dot_dimension_numbers<[1], [0], [0], [1], [0, 0, 1, 1], [], []>} : vector<8x64xbf16>, vector<64x16xbf16>, vector<8x16xf32> -> vector<8x16xf32>
    %c0_15 = arith.constant 0 : index
    %c0_16 = arith.constant 0 : index
    %c0_17 = arith.constant 0 : index
    %21 = vector.load %arg6[%c0_15, %c0_16, %c0_17] : memref<1x1x16xf32, #tpu.memory_space<vmem>>, vector<1x1x16xf32>
    %22 = vector.shape_cast %21 : vector<1x1x16xf32> to vector<1x16xf32>
    %23 = vector.broadcast %22 : vector<1x16xf32> to vector<8x16xf32>
    %24 = arith.addf %20, %23 : vector<8x16xf32>
    %25 = math.tanh %24 : vector<8x16xf32>
    %26 = arith.mulf %25, %25 : vector<8x16xf32>
    %cst_18 = arith.constant dense<0.000000e+00> : vector<8xf32>
    %27 = vector.multi_reduction <add>, %26, %cst_18 [1] : vector<8x16xf32> to vector<8xf32>
    %28 = vector.shape_cast %27 : vector<8xf32> to vector<8x1xf32>
    %cst_19 = arith.constant 1.000000e-24 : f32
    %29 = vector.broadcast %cst_19 : f32 to vector<8x1xf32>
    %30 = arith.maximumf %28, %29 : vector<8x1xf32>
    %31 = math.rsqrt %30 : vector<8x1xf32>
    %32 = vector.broadcast %31 : vector<8x1xf32> to vector<8x16xf32>
    %33 = arith.mulf %25, %32 : vector<8x16xf32>
    %c0_20 = arith.constant 0 : index
    %c0_21 = arith.constant 0 : index
    %c0_22 = arith.constant 0 : index
    %34 = vector.load %arg7[%c0_20, %c0_21, %c0_22] : memref<1x8x16xf32, #tpu.memory_space<vmem>>, vector<1x8x16xf32>
    %35 = vector.shape_cast %34 : vector<1x8x16xf32> to vector<8x16xf32>
    %36 = vector.shape_cast %33 : vector<8x16xf32> to vector<1x8x16xf32>
    tpu.vector_store %arg7[%c0_20, %c0_21, %c0_22], %36 {strides = array<i32>} : memref<1x8x16xf32, #tpu.memory_space<vmem>>, vector<1x8x16xf32>,
    return
  }
  func.func @transform_0(%arg0: i32, %arg1: i32) -> (i32, i32, i32) {
    %c0_i32 = arith.constant 0 : i32
    %c0_i32_0 = arith.constant 0 : i32
    return %arg0, %arg1, %c0_i32 : i32, i32, i32
  }
  func.func @transform_1(%arg0: i32, %arg1: i32) -> (i32, i32, i32) {
    %c0_i32 = arith.constant 0 : i32
    %c0_i32_0 = arith.constant 0 : i32
    %c0_i32_1 = arith.constant 0 : i32
    return %arg0, %c0_i32, %c0_i32_0 : i32, i32, i32
  }
  func.func @transform_2(%arg0: i32, %arg1: i32) -> (i32, i32, i32) {
    %c0_i32 = arith.constant 0 : i32
    %c0_i32_0 = arith.constant 0 : i32
    %c0_i32_1 = arith.constant 0 : i32
    return %arg0, %c0_i32, %c0_i32_0 : i32, i32, i32
  }
  func.func @transform_3(%arg0: i32, %arg1: i32) -> (i32, i32, i32) {
    %c0_i32 = arith.constant 0 : i32
    %c0_i32_0 = arith.constant 0 : i32
    %c0_i32_1 = arith.constant 0 : i32
    return %arg0, %c0_i32, %c0_i32_0 : i32, i32, i32
  }
  func.func @transform_4(%arg0: i32, %arg1: i32) -> (i32, i32, i32) {
    %c0_i32 = arith.constant 0 : i32
    %c0_i32_0 = arith.constant 0 : i32
    %c0_i32_1 = arith.constant 0 : i32
    return %arg0, %c0_i32, %c0_i32_0 : i32, i32, i32
  }
  func.func @transform_5(%arg0: i32, %arg1: i32) -> (i32, i32, i32) {
    %c0_i32 = arith.constant 0 : i32
    %c0_i32_0 = arith.constant 0 : i32
    return %arg0, %arg1, %c0_i32 : i32, i32, i32
  }
}

</mosaic_0001>

<bundles_post_ra>
// kernel: clip_forward.1
= control target key start
LH: loop header
LB: loop body
LE: loop exit
PB: predicated region body
PF: predicated region fallthrough
CT: control target
= control target key end

     0   :  { %s752_s18 = smov 0   ;;  %s754_s19 = smov 0   ;;  %s805_s0 = inlined_call_operand.vmem [shape: bf16[2,8,32], index: 0, kind: input, shape index: {}]   ;;  %s806_s1 = inlined_call_operand.vmem [shape: bf16[2,32,64], index: 1, kind: input, shape index: {}]   ;;  %s807_s2 = inlined_call_operand.vmem [shape: f32[2,1,64], index: 2, kind: input, shape index: {}]   ;;  %s808_s3 = inlined_call_operand.vmem [shape: bf16[2,64,16], index: 3, kind: input, shape index: {}]   ;;  %s809_s4 = inlined_call_operand.vmem [shape: f32[2,1,16], index: 4, kind: input, shape index: {}]   ;;  %s810_s5 = inlined_call_operand.vmem [shape: f32[2,8,16], index: 5, kind: output, shape index: {}]  }
   0x1   :  { %s756_s20 = smov 0  }
   0x2 LB: > { %s27_s21 = sadd.s32 1, %s714_s19  ;;  %p608_p0 = scmp.ge.s32.totalorder %s718_s20, 1  ;;  %s718_s20 = sphi %s756_s20, %s15_s20   ;;  %s714_s19 = sphi %s754_s19, %s812_s19   ;;  %s710_s18 = sphi %s752_s18, %s811_s18  }
   0x3   : > { %p29_p1 = scmp.ge.s32.totalorder %s27_s21, 2  ;;  %p241_p2 = scmp.lt.s32.totalorder %s718_s20, 3 }
   0x5   : > { %s814_s21 = smov (%p29_p1, %s27_s21), 0  ;;  %p242_p3 = pnand %p608_p0, %p241_p2 }
   0x6   : > { %p289_p4 = scmp.lt.s32.totalorder (!%p242_p3), %s710_s18, 1  ;;  %v720_v0 = vmov (!%p242_p3), 0.0   ;;  %vm721_vm0 = vmmov (!%p242_p3), 0   ;;  %vm344_vm1 = vcmask (!%p242_p3), 261120   ;;  %vm434_vm3 = vcmask (!%p242_p3), 523264  }
   0x7   : > { %245 = sbr.rel (%p242_p3) target bundleno = 645 (0x285), region = 40  ;;  %638 = vmatprep.subr.bf16.mxu0 (!%p242_p3), %v720_v0  ;;  %642 = vmatprep.mubr.msk.bf16.mxu0 (!%p242_p3), %vm721_vm0, %v720_v0  ;;  %vm480_vm4 = vcmask (!%p242_p3), 130048  }
   0x8   : > { %646 = vmatprep.subr.bf16.mxu1 (!%p242_p3), %v720_v0  ;;  %654 = vmatprep.mubr.msk.bf16.mxu1 (!%p242_p3), %vm721_vm0, %v720_v0 }
   0xe   : > { %s816_s18 = smov (!%p289_p4, %s710_s18), 1 }
   0xf   : > { %s628_s22 = sshll.u32 %s816_s18, 4  ;;  %s609_s26 = sshll.u32 %s816_s18, 2 }
  0x10   : > { %s300_s25 = scalar_lea.vmem %s806_s1, %s628_s22  ;;  %s295_s29 = scalar_lea.vmem %s805_s0, %s609_s26 }
  0x11   : > { %v684_v1 = vld [vmem:[%s300_s25] sm:$0xff]   ;;  %v685_v2 = vld [vmem:[%s300_s25 + $0x8] sm:$0xff]   ;;  %s629_s30 = sshll.u32 %s816_s18, 5  ;;  %s303_s11 = scalar_lea.vmem %s807_s2, %s816_s18 }
  0x12   : > { %639 = vmatpush3.bf16.msra.mxu0 %v684_v1  ;;  %v320_v3 = vld [vmem:[%s295_s29] sm:$0xf]  ;;  %s308_s8 = scalar_lea.vmem %s808_s3, %s629_s30  ;;  %s311_s14 = scalar_lea.vmem %s809_s4, %s816_s18 }
  0x13   : > { %640 = vmatprep.subr.bf16.mxu0 %v720_v0  ;;  %v686_v4 = vld [vmem:[%s308_s8] sm:$0xff]   ;;  %v687_v5 = vld [vmem:[%s308_s8 + $0x8] sm:$0xff]   ;;  %v688_v6 = vld [vmem:[%s308_s8 + $0x10] sm:$0xff]   ;;  %s614_s15 = sshll.u32 %s816_s18, 3 }
  0x14   : > { %647 = vmatpush3.bf16.msra.mxu1 %v686_v4  ;;  %v689_v7 = vld [vmem:[%s308_s8 + $0x18] sm:$0xff]   ;;  %v615_v8 = vld [vmem:[%s303_s11] ss:$0 sm:$0xff]  ;;  %s318_s22 = scalar_lea.vmem %s810_s5, %s614_s15 }
  0x15   : > { %648 = vmatprep.subr.bf16.mxu1 %v720_v0  ;;  %v620_v20 = vld [vmem:[%s311_s14] ss:$0 sm:$0xff] }
  0x16   : > { %641 = vmatpush3.bf16.msra.mxu0 %v685_v2 }
  0x18   : > { %649 = vmatpush3.bf16.msra.mxu1 %v687_v5 }
  0x19   : > { %643 = vmatmul.mubr.msk.bf16.vlgmr.msra.gmra.mrb[0].mxu0 %vm344_vm1, %v320_v3  ;;  %650 = vmatprep.subr.bf16.mxu1 %v720_v0 }
  0x1c   : > { %651 = vmatpush3.bf16.msra.mxu1 %v688_v6 }
  0x1d   : > { %652 = vmatprep.subr.bf16.mxu1 %v720_v0 }
  0x20   : > { %653 = vmatpush3.bf16.msra.mxu1 %v689_v7 }
  0xec   : > { %v382_v9 = vpop.f32.mrb[0].mxu0 }
  0xed   : > { %v383_v10 = vadd.f32 %v615_v8, %v382_v9  ;;  %v644_v11 = vpop.f32.mrb[1].mxu0 }
  0xee   : > { %v385_v12 = vpop.f32.mrb[2].mxu0 }
  0xef   : > { %v389_v13 = vmin.f32 %v383_v10, 0.0  ;;  %v645_v14 = vpop.f32.mrb[3].mxu0  ;;  %vm388_vm2 = vcmp.gt.f32.partialorder %v383_v10, 0.0 }
  0xf1   : > { %v390_v15 = vmul.f32 1.442695, %v389_v13 }
  0xf3   : > { %690 = vpow2.f32 %v390_v15 }
  0xfd   : > { %v691_v16 = vpop.eup %690 }
  0xfe   : > { %v619_v17 = vadd.f32 -1.0, %v691_v16 }
 0x100   : > { %v393_v18 = vsel %vm388_vm2, %v383_v10, %v619_v17 }
 0x101   : > { %v394_v19 = vpack.c.bf16 %v393_v18, %v393_v18 }
 0x103   : > { %655 = vmatmul.mubr.msk.bf16.vlgmr.msra.gmra.mrb[0].mxu1 %vm434_vm3, %v394_v19 }
 0x1d6   : > { %v472_v21 = vpop.f32.mrb[0].mxu1 }
 0x1d7   : > { %v473_v22 = vadd.f32 %v620_v20, %v472_v21  ;;  %v656_v23 = vpop.f32.mrb[1].mxu1 }
 0x1d8   : > { %v475_v24 = vpop.f32.mrb[2].mxu1 }
 0x1d9   : > { %692 = vtanh.f32 %v473_v22  ;;  %v657_v25 = vpop.f32.mrb[3].mxu1 }
 0x1e3   : > { %v693_v26 = vpop.eup %692 }
 0x1e4   : > { %v479_v27 = vmul.f32 %v693_v26, %v693_v26 }
 0x1e6   : > { %v481_v28 = vsel %vm480_vm4, %v479_v27, 0.0 }
 0x1e7   : > { %482 = vadd.xlane.f32.xlu0 %v481_v28 }
 0x274   : > { %v483_v29 = vpop.xlane.xlu0 %482 }
 0x275   : > { %v484_v30 = vmax.f32 %v483_v29, 1e-24 }
 0x277   : > { %694 = vrsqrt.f32 %v484_v30 }
 0x281   : > { %v695_v31 = vpop.eup %694 }
 0x282   : > { %v486_v32 = vmul.f32 %v695_v31, %v693_v26 }
 0x284   : > { %487 = vst.msk [vmem:[%s318_s22] sm:$0xff] %vm480_vm4, %v486_v32 }
 0x285 PF: > { %s15_s20 = sadd.s32 1, %s718_s20   ;;  %s811_s18 = smov %s714_s19 }
 0x286   : > { %p12_p5 = scmp.ge.s32.totalorder %s15_s20, 4   ;;  %s812_s19 = smov %s814_s21 }
 0x288   :  { %14 = sbr.rel (!%p12_p5) target bundleno = 2 (0x2), region = 82 }

</bundles_post_ra>
